<compile_context>
chip_gen: v7x
topology: tpu7x:2x2x1
jax: 0.10.0
libtpu: 0.0.40
codegen_flags: <defaults>
</compile_context>

<pallas_src>
import math
import jax
import jax.numpy as jnp
from jax.experimental import pallas as pl
from jax.experimental.pallas import tpu as pltpu


def _pick_tile(n_pad, cap):
    """Largest multiple of 128 that divides n_pad and is <= cap."""
    best = 128
    t = 128
    while t <= min(cap, n_pad):
        if n_pad % t == 0:
            best = t
        t += 128
    return best


def _prep_operands(ca, n_pad):
    """Build augmented-gram operands from CA coords.

    ca: (B, N, 3) f32
    Returns:
      lhs   (B, n_pad, 5): rows [x, y, z, |x|^2, 1]        (padding rows zero)
      rhs_t (B, 5, n_pad): cols [-2x, -2y, -2z, 1, |x|^2]  (padding cols zero)
    so that lhs @ rhs_t == squared pairwise distances.
    """
    B, N, _ = ca.shape
    sq = jnp.sum(ca * ca, axis=-1, keepdims=True)            # (B, N, 1)
    ones = jnp.ones_like(sq)
    lhs = jnp.concatenate([ca, sq, ones], axis=-1)            # (B, N, 5)
    rhs = jnp.concatenate([-2.0 * ca, ones, sq], axis=-1)     # (B, N, 5)
    pad = n_pad - N
    if pad:
        lhs = jnp.pad(lhs, ((0, 0), (0, pad), (0, 0)))
        rhs = jnp.pad(rhs, ((0, 0), (0, pad), (0, 0)))
    rhs_t = jnp.transpose(rhs, (0, 2, 1))                     # (B, 5, n_pad)
    return lhs, rhs_t


def masked_pairwise_distance(ca):
    """ca: (B, N, 3) f32 -> (B, N, N) f32, off-diagonal pairwise distances
    (diagonal zeroed; equivalent to cdist(ca, ca) * (1 - eye(N)))."""
    ca = ca.astype(jnp.float32)
    B, N, _ = ca.shape
    n_pad = ((N + 127) // 128) * 128
    TI = _pick_tile(n_pad, 256)
    TJ = _pick_tile(n_pad, 512)

    lhs, rhs_t = _prep_operands(ca, n_pad)
    grid = (B, n_pad // TI, n_pad // TJ)

    def kernel(lhs_ref, rhs_ref, out_ref):
        # lhs_ref: (1, TI, 5)  rhs_ref: (1, 5, TJ)  out_ref: (1, TI, TJ)
        i = pl.program_id(1)
        j = pl.program_id(2)
        a = lhs_ref[0]                                        # (TI, 5)
        b = rhs_ref[0]                                        # (5, TJ)
        # Squared distances via a single MXU matmul (K = 5, padded for free).
        d2 = jax.lax.dot_general(
            a, b, (((1,), (0,)), ((), ())),
            preferred_element_type=jnp.float32)               # (TI, TJ)
        dist = jnp.sqrt(jnp.maximum(d2, 0.0))
        # Fused observation mask (1 - eye) + padding bounds mask, no mask DMA.
        row = i * TI + jax.lax.broadcasted_iota(jnp.int32, (TI, TJ), 0)
        col = j * TJ + jax.lax.broadcasted_iota(jnp.int32, (TI, TJ), 1)
        keep = (row != col) & (row < N) & (col < N)
        out_ref[0] = jnp.where(keep, dist, 0.0)

    out_padded = pl.pallas_call(
        kernel,
        out_shape=jax.ShapeDtypeStruct((B, n_pad, n_pad), jnp.float32),
        grid_spec=pltpu.PrefetchScalarGridSpec(
            num_scalar_prefetch=0,
            grid=grid,
            in_specs=[
                pl.BlockSpec((1, TI, 5), lambda b, i, j: (b, i, 0)),
                pl.BlockSpec((1, 5, TJ), lambda b, i, j: (b, 0, j)),
            ],
            out_specs=pl.BlockSpec((1, TI, TJ), lambda b, i, j: (b, i, j)),
        ),
        compiler_params=pltpu.CompilerParams(
            # All axes independent (no accumulation): shard freely across TCs.
            dimension_semantics=("parallel", "parallel", "parallel")),
        # Per-step VMEM <= ~1 MiB (256x512 f32 out, double-buffered) -- well
        # under the 16/32 MiB scoped defaults on v5e/v6e/v7x, so no explicit
        # vmem_limit_bytes needed.
    )(lhs, rhs_t)

    if n_pad == N:
        return out_padded
    return out_padded[:, :N, :N]


class DistanceMeasurementJAX:
    """JAX/Pallas port of DistanceMeasurement (forward path)."""

    def __init__(self, name, config, X_true, C, key):
        self.name = name
        self.config = config
        self.current_sigma = float(config.get("noise_level", 1.0))
        # TODO(synk): DiffusionAwareNoiseScheduler / Lipschitz estimation are
        # training-time scalar bookkeeping, not part of the forward hot path.
        self._create_measurement(X_true, C, key)

    def _create_measurement(self, X_true, C, key):
        # X_true: (1, N, A, 3) or (N, A, 3)
        X_flat = X_true[0] if (X_true.ndim == 4 and X_true.shape[0] == 1) else X_true
        n = X_flat.shape[0]
        # Clean distance matrix for observation generation (one-time plain
        # JAX glue; direct (xi-xj)^2 form for best precision).
        ca = X_flat[:, 1, :].astype(jnp.float32)               # (N, 3)
        diff = ca[:, None, :] - ca[None, :, :]
        D = jnp.sqrt(jnp.maximum(jnp.sum(diff * diff, axis=-1), 0.0))
        # n_distances == -1 path: observe all off-diagonal pairs.
        # TODO(synk): the n_distances != -1 random pair-sampling mask path is
        # not implemented; the kernel fuses the (1 - eye) mask in-kernel.
        mask = jnp.ones((n, n), jnp.float32) - jnp.eye(n, dtype=jnp.float32)
        Y_clean = mask * D
        sigma_true = float(self.config.get("true_noise_level", self.current_sigma))
        noise = jax.random.normal(key, Y_clean.shape, jnp.float32)
        Y = jnp.clip(Y_clean + noise * sigma_true * mask, 0.0, None)
        self.data = {
            "mask": mask,
            "Y": Y,
            "Y_clean": Y_clean,
            "true_noise_level": sigma_true,
            "n_observed": int(float(jnp.sum(mask)) / 2),
            "n_total": int(n * (n - 1) / 2),
        }

    def forward(self, X, C):
        # X: (B, N, A, 3); C unused by forward.
        ca = X[:, :, 1, :].astype(jnp.float32)                 # (B, N, 3)
        # The (1 - eye) observation mask is applied inside the kernel.
        return masked_pairwise_distance(ca)

    def log_likelihood(self, X, C):
        pred = self.forward(X, C)
        Y = jnp.broadcast_to(self.data["Y"][None], pred.shape)
        diff = (pred - Y) * self.data["mask"]
        sigma = float(self.current_sigma)
        ll = -0.5 * jnp.sum(diff * diff, axis=(1, 2)) / (sigma * sigma)
        n_obs = float(jnp.sum(self.data["mask"]))
        return ll - 0.5 * n_obs * math.log(2 * math.pi * sigma * sigma)


if __name__ == "__main__":
    key = jax.random.PRNGKey(0)
    k_xtrue, k_x, k_noise = jax.random.split(key, 3)

    B, N, A, D3 = 2, 16, 4, 3          # batch, residues, atoms, xyz
    config = {"noise_level": 0.5, "true_noise_level": 0.5,
              "n_distances": -1, "auto_lipschitz": False}

    X_true = jax.random.normal(k_xtrue, (1, N, A, D3), jnp.float32) * 3.0
    C = jnp.ones((1, N), jnp.float32)

    meas = DistanceMeasurementJAX("distances", config, X_true, C, k_noise)

    X = jax.random.normal(k_x, (B, N, A, D3), jnp.float32) * 3.0
    out = meas.forward(X, C)
    out = jax.block_until_ready(out)

    # Pure-JAX reference check.
    ca = X[:, :, 1, :]
    diff = ca[:, :, None, :] - ca[:, None, :, :]
    ref = jnp.sqrt(jnp.maximum(jnp.sum(diff * diff, axis=-1), 0.0)) * meas.data["mask"][None]
    assert out.shape == (B, N, N)
    assert jnp.allclose(out, ref, atol=1e-4, rtol=1e-4), float(jnp.max(jnp.abs(out - ref)))

    print("KERNEL_OK")
</pallas_src>

<mosaic_0001>
module attributes {stable_mosaic.version = 11 : i64} {
  func.func @kernel(%arg0: i32, %arg1: i32, %arg2: i32, %arg3: memref<1x128x5xf32, #tpu.memory_space<vmem>>, %arg4: memref<1x5x128xf32, #tpu.memory_space<vmem>>, %arg5: memref<1x128x128xf32, #tpu.memory_space<vmem>>) attributes {dimension_semantics = [#tpu.dimension_semantics<parallel>, #tpu.dimension_semantics<parallel>, #tpu.dimension_semantics<parallel>], iteration_bounds = array<i64: 2, 1, 1>, scalar_prefetch = 0 : i64, scratch_operands = 0 : i64, tpu.core_type = #tpu.core_type<tc>, window_params = [{transform_indices = @transform_0, window_bounds = array<i64: 1, 128, 5>}, {transform_indices = @transform_1, window_bounds = array<i64: 1, 5, 128>}, {transform_indices = @transform_2, window_bounds = array<i64: 1, 128, 128>}]} {
    %c0 = arith.constant 0 : index
    %c0_0 = arith.constant 0 : index
    %c0_1 = arith.constant 0 : index
    %0 = vector.load %arg3[%c0, %c0_0, %c0_1] : memref<1x128x5xf32, #tpu.memory_space<vmem>>, vector<1x128x5xf32>
    %1 = vector.shape_cast %0 : vector<1x128x5xf32> to vector<128x5xf32>
    %c0_2 = arith.constant 0 : index
    %c0_3 = arith.constant 0 : index
    %c0_4 = arith.constant 0 : index
    %2 = vector.load %arg4[%c0_2, %c0_3, %c0_4] : memref<1x5x128xf32, #tpu.memory_space<vmem>>, vector<1x5x128xf32>
    %3 = vector.shape_cast %2 : vector<1x5x128xf32> to vector<5x128xf32>
    %cst = arith.constant dense<0.000000e+00> : vector<128x128xf32>
    %4 = tpu.matmul %1, %3, %cst {dimension_numbers = #tpu.dot_dimension_numbers<[1], [0], [0], [1], [0, 0, 1, 1], [], []>} : vector<128x5xf32>, vector<5x128xf32>, vector<128x128xf32> -> vector<128x128xf32>
    %cst_5 = arith.constant 0.000000e+00 : f32
    %5 = vector.broadcast %cst_5 : f32 to vector<128x128xf32>
    %6 = arith.maximumf %4, %5 : vector<128x128xf32>
    %7 = math.sqrt %6 : vector<128x128xf32>
    %c128_i32 = arith.constant 128 : i32
    %8 = arith.muli %arg1, %c128_i32 : i32
    %9 = tpu.iota {dimensions = array<i32: 0>} : vector<128x128xi32>
    %10 = vector.broadcast %8 : i32 to vector<128x128xi32>
    %11 = arith.addi %10, %9 : vector<128x128xi32>
    %c128_i32_6 = arith.constant 128 : i32
    %12 = arith.muli %arg2, %c128_i32_6 : i32
    %13 = tpu.iota {dimensions = array<i32: 1>} : vector<128x128xi32>
    %14 = vector.broadcast %12 : i32 to vector<128x128xi32>
    %15 = arith.addi %14, %13 : vector<128x128xi32>
    %16 = arith.cmpi ne, %11, %15 : vector<128x128xi32>
    %c16_i32 = arith.constant 16 : i32
    %17 = vector.broadcast %c16_i32 : i32 to vector<128x128xi32>
    %18 = arith.cmpi slt, %11, %17 : vector<128x128xi32>
    %19 = arith.andi %16, %18 : vector<128x128xi1>
    %c16_i32_7 = arith.constant 16 : i32
    %20 = vector.broadcast %c16_i32_7 : i32 to vector<128x128xi32>
    %21 = arith.cmpi slt, %15, %20 : vector<128x128xi32>
    %22 = arith.andi %19, %21 : vector<128x128xi1>
    %cst_8 = arith.constant 0.000000e+00 : f32
    %23 = vector.broadcast %cst_8 : f32 to vector<128x128xf32>
    %24 = arith.select %22, %7, %23 : vector<128x128xi1>, vector<128x128xf32>
    %c0_9 = arith.constant 0 : index
    %c0_10 = arith.constant 0 : index
    %c0_11 = arith.constant 0 : index
    %25 = vector.load %arg5[%c0_9, %c0_10, %c0_11] : memref<1x128x128xf32, #tpu.memory_space<vmem>>, vector<1x128x128xf32>
    %26 = vector.shape_cast %25 : vector<1x128x128xf32> to vector<128x128xf32>
    %27 = vector.shape_cast %24 : vector<128x128xf32> to vector<1x128x128xf32>
    tpu.vector_store %arg5[%c0_9, %c0_10, %c0_11], %27 {strides = array<i32>} : memref<1x128x128xf32, #tpu.memory_space<vmem>>, vector<1x128x128xf32>,
    return
  }
  func.func @transform_0(%arg0: i32, %arg1: i32, %arg2: i32) -> (i32, i32, i32) {
    %c0_i32 = arith.constant 0 : i32
    %c0_i32_0 = arith.constant 0 : i32
    return %arg0, %arg1, %c0_i32 : i32, i32, i32
  }
  func.func @transform_1(%arg0: i32, %arg1: i32, %arg2: i32) -> (i32, i32, i32) {
    %c0_i32 = arith.constant 0 : i32
    %c0_i32_0 = arith.constant 0 : i32
    return %arg0, %c0_i32, %arg2 : i32, i32, i32
  }
  func.func @transform_2(%arg0: i32, %arg1: i32, %arg2: i32) -> (i32, i32, i32) {
    %c0_i32 = arith.constant 0 : i32
    return %arg0, %arg1, %arg2 : i32, i32, i32
  }
}

</mosaic_0001>

<bundles_post_ra>
// kernel: tpu_custom_call.1
= control target key start
LH: loop header
LB: loop body
LE: loop exit
PB: predicated region body
PF: predicated region fallthrough
CT: control target
= control target key end

     0   :  { %7 = vsyncpa [#allocation3], 0  ;;  %s1222_s0 = inlined_call_operand.vmem [shape: f32[2,128,5], index: 0, kind: input, shape index: {}]   ;;  %s1223_s1 = inlined_call_operand.vmem [shape: f32[2,5,128], index: 1, kind: input, shape index: {}]   ;;  %s1224_s2 = inlined_call_operand.hbm [shape: f32[2,128,128], index: 2, kind: output, shape index: {}]  }
   0x1   :  { %9 = vsyncpa [#allocation3 + $0x1], 0  ;;  %s1044_s9 = smov 0   ;;  %s1046_s10 = smov 0  }
   0x2   :  { %s1048_s11 = smov 0   ;;  %s1050_s12 = smov 0  }
   0x3   :  { %s1052_s13 = smov 0   ;;  %s1054_s14 = smov 0  }
   0x4 LB: > { %s805_s15 = sadd.s32 4294967295, %s1023_s14   ;;  %s806_s16 = sadd.s32 4294967294, %s1023_s14   ;;  %s1023_s14 = sphi %s1054_s14, %s15_s14   ;;  %s1019_s13 = sphi %s1052_s13, %s1231_s13   ;;  %s1015_s12 = sphi %s1050_s12, %s1230_s12   ;;  %s1011_s11 = sphi %s1048_s11, %s1229_s11   ;;  %s1007_s10 = sphi %s1046_s10, %s1228_s10   ;;  %s1003_s9 = sphi %s1044_s9, %s1227_s9  }
   0x5   : > { %s34_s17 = sadd.s32 1, %s1019_s13  ;;  %s101_s18 = sadd.s32 1, %s1011_s11 }
   0x6   : > { %p36_p0 = scmp.ge.s32.totalorder %s34_s17, 2  ;;  %p111_p1 = scmp.ne.s32.totalorder %s1011_s11, %s1007_s10 }
   0x7   : > { %p112_p2 = scmp.eq.s32.totalorder %s805_s15, 1  ;;  %p117_p3 = scmp.ne.s32.totalorder %s1007_s10, %s1003_s9 }
   0x8   : > { %s1233_s17 = smov (%p36_p0, %s34_s17), 0  ;;  %p118_p5 = scmp.eq.s32.totalorder %s806_s16, 1 }
   0x9   : > { %p1084_p4 = por %p112_p2, %p111_p1  ;;  %s94_s20 = ssub.s32 %s1019_s13, %s1233_s17 }
   0xa   : > { %p809_p6 = scmp.ge.s32.totalorder %s1023_s14, 1  ;;  %p99_p7 = scmp.eq.s32.totalorder %s94_s20, 0 }
   0xb   : > { %p1091_p8 = por %p118_p5, %p117_p3  ;;  %p159_p9 = scmp.lt.s32.totalorder %s1023_s14, 3 }
   0xc   : > { %s1097_s22 = scalar_select %p99_p7, %s1011_s11, %s101_s18  }
   0xd   : > { %p160_p10 = pnand %p809_p6, %p159_p9 }
   0xe   : > { %p193_p11 = scmp.lt.s32.totalorder (!%p160_p10), %s1015_s12, 1  ;;  %vm276_vm0 = vcmask (!%p160_p10), 1044480   ;;  %vm227_vm1 = vcmask (!%p160_p10), 39936   ;;  %s189_s4 = sand.u32 (!%p160_p10), 1, %s1007_s10   ;;  %v1025_v17 = vmov (!%p160_p10), 0.0   ;;  %v554_v19 = vlaneseq (!%p160_p10) }
   0xf   : > { %163 = sbr.rel (%p160_p10) target bundleno = 275 (0x113), region = 28  ;;  %s810_s5 = sshll.u32 (!%p160_p10), %s189_s4, 7 }
  0x10   : > { %s1144_s6 = scalar_lea.vmem (!%p160_p10), [#allocation2], %s810_s5  ;;  %v555_v25 = vshrl.u32 (!%p160_p10), %v554_v19, 7  ;;  %v590_v31 = vand.u32 (!%p160_p10), 127, %v554_v19  ;;  %s837_s7 = sshll.u32 (!%p160_p10), %s1015_s12, 11 }
  0x11   : > { %676 = vst [vmem:[%s1144_s6 + $0x10] sm:$0xff] (!%p160_p10), %v1025_v17  ;;  %677 = vst [vmem:[%s1144_s6 + $0x18] sm:$0xff] (!%p160_p10), %v1025_v17  ;;  %s707_s8 = sshll.u32 (!%p160_p10), %s1144_s6, 4  ;;  %s1168_s16 = scalar_lea.hbm (!%p160_p10), %s1224_s2, %s837_s7  ;;  %s1170_s8 = int_to_ptr.vmem [resolvable:$true] %s707_s8 }
  0x12   : > { %678 = vst [vmem:[%s1144_s6 + $0x20] sm:$0xff] (!%p160_p10), %v1025_v17  ;;  %679 = vst [vmem:[%s1144_s6 + $0x28] sm:$0xff] (!%p160_p10), %v1025_v17  ;;  %v556_v30 = vadd.s32 (!%p160_p10), 8, %v555_v25  ;;  %vm641_vm3 = vcmp.lt.s32.totalorder (!%p160_p10), %v590_v31, 16  ;;  %vm593_vm4 = vcmp.ne.s32.totalorder (!%p160_p10), %v555_v25, %v590_v31  ;;  %s1176_s18 = scalar_lea.sflag (!%p160_p10), [#allocation3], %s189_s4  ;;  %s945_s20 = scalar_lea.vmem (!%p160_p10), %s1170_s8, 2048 }
  0x13   : > { %680 = vst [vmem:[%s1144_s6 + $0x30] sm:$0xff] (!%p160_p10), %v1025_v17  ;;  %681 = vst [vmem:[%s1144_s6 + $0x38] sm:$0xff] (!%p160_p10), %v1025_v17  ;;  %p946_p12 = scmp.ne.s32.totalorder (!%p160_p10), %s1170_s8, %s945_s20 }
  0x14   : > { %682 = vst [vmem:[%s1144_s6 + $0x40] sm:$0xff] (!%p160_p10), %v1025_v17  ;;  %683 = vst [vmem:[%s1144_s6 + $0x48] sm:$0xff] (!%p160_p10), %v1025_v17  ;;  %vm594_vm2 = vcmp.ne.s32.totalorder (!%p160_p10), %v556_v30, %v590_v31 }
  0x15   : > { %684 = vst [vmem:[%s1144_s6 + $0x50] sm:$0xff] (!%p160_p10), %v1025_v17  ;;  %685 = vst [vmem:[%s1144_s6 + $0x58] sm:$0xff] (!%p160_p10), %v1025_v17  ;;  %p947_p13 = pnand (!%p160_p10), %p946_p12, %p1084_p4 }
  0x16   : > { %s194_s23 = scalar_select %p193_p11, %s1015_s12, 1  ;;  %686 = vst [vmem:[%s1144_s6 + $0x60] sm:$0xff] %v1025_v17  ;;  %687 = vst [vmem:[%s1144_s6 + $0x68] sm:$0xff] %v1025_v17 }
  0x17   : > { %688 = vst [vmem:[%s1144_s6 + $0x70] sm:$0xff] %v1025_v17  ;;  %689 = vst [vmem:[%s1144_s6 + $0x78] sm:$0xff] %v1025_v17  ;;  %p948_p0 = pneg %p947_p13 }
  0x18   : > { %s836_s24 = sshll.u32 %s194_s23, 7  ;;  %s813_s25 = sshll.u32 %s194_s23, 3  ;;  %vm643_vm6 = vmand %vm594_vm2, %vm641_vm3 }
  0x19   : > { %s1104_s28 = scalar_lea.vmem %s1222_s0, %s836_s24  ;;  %s208_s3 = scalar_lea.vmem %s1223_s1, %s813_s25  ;;  %vm642_vm9 = vmand %vm593_vm4, %vm641_vm3 }
  0x1a   : > { %v226_v0 = vld [vmem:[%s208_s3] sm:$0x1f]  ;;  %v211_v2 = vld [vmem:[%s1104_s28 + $0x8] sm:$0xff]  ;;  %v212_v4 = vld [vmem:[%s1104_s28 + $0x10] sm:$0xff]  ;;  %s1026_s23 = smov [#allocation2]  }
  0x1b   : > { %v210_v1 = vld [vmem:[%s1104_s28] sm:$0xff]  ;;  %855 = vmatprep.subr.msk.mxu0 %vm276_vm0, %v226_v0  ;;  %881 = vmatprep.subr.msk.mxu1 %vm276_vm0, %v226_v0  ;;  %v219_v5 = vld [vmem:[%s1104_s28 + $0x48] sm:$0xff]  ;;  %v220_v6 = vld [vmem:[%s1104_s28 + $0x50] sm:$0xff]  ;;  %s949_s24 = sshll.u32 %s1026_s23, 4  ;;  %s950_s24 = int_to_ptr.vmem [resolvable:$false] %s949_s24 }
  0x1c   : > { %857 = vmatprep.mubr.msk.f32.mxu0 %vm227_vm1, %v210_v1  ;;  %v218_v3 = vld [vmem:[%s1104_s28 + $0x40] sm:$0xff]  ;;  %856 = vmatpush3.msk.msra.mxu0 %vm276_vm0, %v226_v0  ;;  %v213_v7 = vld [vmem:[%s1104_s28 + $0x18] sm:$0xff]  ;;  %v215_v11 = vld [vmem:[%s1104_s28 + $0x28] sm:$0xff]  ;;  %s951_s25 = scalar_lea.vmem %s950_s24, 4096  ;;  %p952_p1 = scmp.lt.s32.totalorder %s1170_s8, %s950_s24 }
  0x1d   : > { %858 = vmatmul.mubr.msk.f32.vlgmr.msra.gmra.mrb[0].mxu0 %vm227_vm1, %v211_v2  ;;  %882 = vmatpush3.msk.msra.mxu1 %vm276_vm0, %v226_v0  ;;  %v214_v8 = vld [vmem:[%s1104_s28 + $0x20] sm:$0xff]  ;;  %v221_v9 = vld [vmem:[%s1104_s28 + $0x58] sm:$0xff]  ;;  %v216_v12 = vld [vmem:[%s1104_s28 + $0x30] sm:$0xff]  ;;  %p953_p2 = scmp.lt.s32.totalorder %s951_s25, %s945_s20 }
  0x1e   : > { %869 = vmatprep.mubr.msk.f32.mxu1 %vm227_vm1, %v218_v3  ;;  %860 = vmatprep.mubr.msk.f32.mxu0 %vm227_vm1, %v212_v4  ;;  %v222_v10 = vld [vmem:[%s1104_s28 + $0x60] sm:$0xff]  ;;  %v223_v13 = vld [vmem:[%s1104_s28 + $0x68] sm:$0xff]  ;;  %v224_v14 = vld [vmem:[%s1104_s28 + $0x70] sm:$0xff] }
  0x1f   : > { %870 = vmatmul.mubr.msk.f32.vlgmr.msra.gmra.mrb[0].mxu1 %vm227_vm1, %v219_v5  ;;  %v217_v15 = vld [vmem:[%s1104_s28 + $0x38] sm:$0xff]  ;;  %p954_p3 = por %p953_p2, %p952_p1 }
  0x20   : > { %872 = vmatprep.mubr.msk.f32.mxu1 %vm227_vm1, %v220_v6  ;;  %v225_v16 = vld [vmem:[%s1104_s28 + $0x78] sm:$0xff] }
  0x21   : > { %861 = vmatmul.mubr.msk.f32.gmra.mrb[2].mxu0 %vm227_vm1, %v213_v7  ;;  %p955_p5 = pnand %p954_p3, %p948_p0 }
  0x22   : > { %863 = vmatprep.mubr.msk.f32.mxu0 %vm227_vm1, %v214_v8 }
  0x23   : > { %873 = vmatmul.mubr.msk.f32.gmra.mrb[2].mxu1 %vm227_vm1, %v221_v9 }
  0x24   : > { %875 = vmatprep.mubr.msk.f32.mxu1 %vm227_vm1, %v222_v10 }
  0x25   : > { %864 = vmatmul.mubr.msk.f32.gmra.mrb[4].mxu0 %vm227_vm1, %v215_v11 }
  0x26   : > { %866 = vmatprep.mubr.msk.f32.mxu0 %vm227_vm1, %v216_v12 }
  0x27   : > { %876 = vmatmul.mubr.msk.f32.gmra.mrb[4].mxu1 %vm227_vm1, %v223_v13 }
  0x28   : > { %878 = vmatprep.mubr.msk.f32.mxu1 %vm227_vm1, %v224_v14 }
  0x29   : > { %867 = vmatmul.mubr.msk.f32.gmra.mrb[6].mxu0 %vm227_vm1, %v217_v15 }
  0x2b   : > { %879 = vmatmul.mubr.msk.f32.gmra.mrb[6].mxu1 %vm227_vm1, %v225_v16 }
  0xf0   : > { %v859_v18 = vpop.f32.mrb[0].mxu0 }
  0xf1   : > { %v426_v20 = vmax.f32 %v859_v18, 0.0  ;;  %v346_v21 = vpop.f32.mrb[1].mxu0 }
  0xf2   : > { %v425_v22 = vmax.f32 %v346_v21, 0.0  ;;  %v871_v23 = vpop.f32.mrb[0].mxu1 }
  0xf3   : > { %941 = vrsqrt.f32 %v426_v20  ;;  %v386_v24 = vpop.f32.mrb[1].mxu1  ;;  %vm450_vm5 = vcmp.eq.f32.partialorder %v426_v20, inf  ;;  %v453_v42 = vand.u32 2147483648, %v426_v20  ;;  %vm452_vm7 = vcmp.eq.f32.partialorder %v426_v20, 0.0 }
  0xf4   : > { %943 = vrsqrt.f32 %v425_v22  ;;  %v862_v26 = vpop.f32.mrb[2].mxu0  ;;  %vm443_vm8 = vcmp.eq.f32.partialorder %v425_v22, inf  ;;  %v446_v46 = vand.u32 2147483648, %v425_v22  ;;  %vm445_vm10 = vcmp.eq.f32.partialorder %v425_v22, 0.0 }
  0xf5   : > { %v356_v27 = vpop.f32.mrb[3].mxu0 }
  0xf6   : > { %v874_v28 = vpop.f32.mrb[2].mxu1 }
  0xf7   : > { %v396_v29 = vpop.f32.mrb[3].mxu1 }
  0xf8   : > { %v865_v32 = vpop.f32.mrb[4].mxu0 }
  0xf9   : > { %v366_v33 = vpop.f32.mrb[5].mxu0 }
  0xfa   : > { %v877_v34 = vpop.f32.mrb[4].mxu1 }
  0xfb   : > { %v406_v35 = vpop.f32.mrb[5].mxu1 }
  0xfc   : > { %v868_v36 = vpop.f32.mrb[6].mxu0 }
  0xfd   : > { %v942_v37 = vpop.eup %941  ;;  %v376_v38 = vpop.f32.mrb[7].mxu0 }
  0xfe   : > { %v944_v39 = vpop.eup %943  ;;  %v449_v40 = vmul.f32 %v942_v37, %v426_v20  ;;  %v880_v41 = vpop.f32.mrb[6].mxu1 }
  0xff   : > { %v442_v43 = vmul.f32 %v944_v39, %v425_v22  ;;  %v416_v44 = vpop.f32.mrb[7].mxu1 }
 0x100   : > { %v451_v45 = vsel %vm450_vm5, %v426_v20, %v449_v40 }
 0x101   : > { %v454_v47 = vsel %vm452_vm7, %v453_v42, %v451_v45  ;;  %v444_v48 = vsel %vm443_vm8, %v425_v22, %v442_v43 }
 0x102   : > { %v659_v49 = vsel %vm643_vm6, %v454_v47, 0.0  ;;  %v447_v50 = vsel %vm445_vm10, %v446_v46, %v444_v48 }
 0x103   : > { %675 = vst [vmem:[%s1144_s6 + $0x8] sm:$0xff] %v659_v49  ;;  %v658_v51 = vsel %vm642_vm9, %v447_v50, 0.0 }
 0x104   : > { %674 = vst [vmem:[%s1144_s6] sm:$0xff] %v658_v51 }
 0x105   : > { %958 = shalt.err (!%p955_p5)
}
 0x106   : > { %s959_s26 = scalar_lea.hbm %s1168_s16, 2048  ;;  %s963_s29 = scalar_lea.hbm %s1224_s2, 4096 }
 0x107   : > { %p960_p6 = scmp.ne.s32.totalorder %s1168_s16, %s959_s26  ;;  %p964_p10 = scmp.lt.u32.totalorder %s1168_s16, %s1224_s2 }
 0x108   : > { %p965_p11 = scmp.lt.u32.totalorder %s963_s29, %s959_s26  ;;  %p967_p13 = scmp.lt.u32.totalorder %s959_s26, %s1168_s16 }
 0x109   : > { %p961_p7 = pnand %p960_p6, %p1084_p4 }
 0x10a   : > { %p966_p12 = por %p965_p11, %p964_p10 }
 0x10b   : > { %p962_p9 = pneg %p961_p7 }
 0x10c   : > { %p968_p0 = por %p967_p13, %p966_p12 }
 0x10e   : > { %p969_p1 = pnand %p968_p0, %p962_p9 }
 0x110   : > { %972 = shalt.err (!%p969_p1)
}
 0x111   : > { %s1027_s4 = smov 128   ;;  %s1028_s5 = smov 8  }
 0x112   : > { %883 = dma.vmem_to_hbm [thread:$0]  (%p1084_p4), %s1170_s8, 2048, %s1168_s16, %s1176_s18, %s1027_s4, %s1027_s4, %s1028_s5  }
 0x113 PF: > { %p889_p2 = scmp.ge.s32.totalorder %s1023_s14, 2  ;;  %s722_s6 = sand.u32 1, %s1003_s9  }
 0x114   : > { %s723_s7 = scalar_lea.sflag [#allocation3], %s722_s6 }
 0x115   : > { %p886_p3 = pnand %p889_p2, %p1091_p8 }
 0x117   : > { %998 = dma.done.wait (!%p886_p3), %s723_s7, 2048  }
 0x118   : > { %1000 = vsyncadd (!%p886_p3), %s723_s7, 4294965248  ;;  %s15_s14 = sadd.s32 1, %s1023_s14   ;;  %s1227_s9 = smov %s1007_s10 }
 0x119   : > { %p12_p5 = scmp.ge.s32.totalorder %s15_s14, 4   ;;  %s1228_s10 = smov %s1011_s11 }
 0x11a   : > { %s1229_s11 = smov %s1097_s22  ;;  %s1230_s12 = smov %s1019_s13 }
 0x11b   : > { %s1231_s13 = smov %s1233_s17  ;;  %14 = sbr.rel (!%p12_p5) target bundleno = 4 (0x4), region = 66 }
 0x122   :  { %728 = vsyncpa [#allocation3], 1 }
 0x123   :  { %730 = vsyncpa [#allocation3 + $0x1], 1 }

</bundles_post_ra>
